<compile_context>
chip_gen: v7x
topology: tpu7x:2x2x1
jax: 0.10.0
libtpu: 0.0.40
codegen_flags: <defaults>
</compile_context>

<pallas_src>
import jax
import jax.numpy as jnp
from jax.experimental import pallas as pl
from jax.experimental.pallas import tpu as pltpu

IN_F = 85     # input features
H1_F = 256    # hidden 1
H2_F = 128    # hidden 2
OUT_F = 83    # real output features
OUT_P = 128   # output padded to 128 lanes for lane-dense, unmasked vst
BN_EPS = 1e-5


def _mlp_kernel(x_ref, w1_ref, b1_ref, w2_ref, b2_ref, w3_ref, b3_ref, o_ref):
    # layer1: Linear(85->256) with BN folded into weights/shift, + ReLU
    x = x_ref[...].astype(jnp.bfloat16)                       # (TB, 85)
    h1 = jnp.dot(x, w1_ref[...], preferred_element_type=jnp.float32)
    h1 = jnp.maximum(h1 + b1_ref[...], 0.0)                   # (TB, 256) f32
    # layer2: Linear(256->128) with BN folded, + ReLU
    h2 = jnp.dot(h1.astype(jnp.bfloat16), w2_ref[...],
                 preferred_element_type=jnp.float32)
    h2 = jnp.maximum(h2 + b2_ref[...], 0.0)                   # (TB, 128) f32
    # decoder: Linear(128->83), output columns zero-padded to 128 lanes;
    # store in bf16 (o_ref dtype) to halve output HBM traffic.
    y = jnp.dot(h2.astype(jnp.bfloat16), w3_ref[...],
                preferred_element_type=jnp.float32) + b3_ref[...]
    o_ref[...] = y.astype(o_ref.dtype)


def _round_up(n, m):
    return ((n + m - 1) // m) * m


def nn_forward_pallas(x, params, tb=2048, min_grid_steps=2):
    """x: (B, 85) float32 or bfloat16 -> (B, 128) bfloat16.

    Columns 0..82 hold the decoder output; columns 83..127 are exactly zero
    (zero weight columns / zero bias).  Consumers should slice lazily / fuse
    the slice rather than materializing an 83-wide copy.
    """
    w1, b1, w2, b2, w3, b3 = params
    B = x.shape[0]

    # batch tile: multiple of 8 sublanes (the (8,128) rule), no bigger than
    # the (sublane-rounded) batch.
    tb = max(8, (int(tb) // 8) * 8)
    # ensure >= min_grid_steps grid steps when the batch allows it, so the
    # "parallel" axis can shard across both v7x TensorCores.
    if B > 8 * min_grid_steps:
        tb = min(tb, _round_up(pl.cdiv(B, min_grid_steps), 8))
    tb = min(tb, _round_up(B, 8))

    grid = (pl.cdiv(B, tb),)   # non-divisible grid: tail rows are masked
    out = pl.pallas_call(
        _mlp_kernel,
        out_shape=jax.ShapeDtypeStruct((B, OUT_P), jnp.bfloat16),
        grid=grid,
        in_specs=[
            pl.BlockSpec((tb, IN_F), lambda i: (i, 0)),   # x: batch-tiled
            pl.BlockSpec(w1.shape, lambda i: (0, 0)),     # weights: resident
            pl.BlockSpec(b1.shape, lambda i: (0, 0)),
            pl.BlockSpec(w2.shape, lambda i: (0, 0)),
            pl.BlockSpec(b2.shape, lambda i: (0, 0)),
            pl.BlockSpec(w3.shape, lambda i: (0, 0)),
            pl.BlockSpec(b3.shape, lambda i: (0, 0)),
        ],
        out_specs=pl.BlockSpec((tb, OUT_P), lambda i: (i, 0)),
        compiler_params=pltpu.CompilerParams(
            dimension_semantics=("parallel",)),
    )(x, w1, b1, w2, b2, w3, b3)
    return out


def nn_forward(x, params, tb=2048):
    """Strict module semantics: (B, 85) -> (B, 83) f32.

    NOTE: the final slice/cast is an extra HBM pass; prefer consuming the
    padded bf16 output of nn_forward_pallas directly when possible.
    """
    return nn_forward_pallas(x, params, tb=tb)[:, :OUT_F].astype(jnp.float32)


def init_params(key):
    """Deterministic synthetic parameters (PyTorch-like uniform init),
    with eval-mode BatchNorm folded into the linear layers."""
    ks = jax.random.split(key, 6)

    def lin(kw, kb, fan_in, fan_out):
        bound = 1.0 / jnp.sqrt(fan_in)
        w = jax.random.uniform(kw, (fan_in, fan_out), jnp.float32, -bound, bound)
        b = jax.random.uniform(kb, (fan_out,), jnp.float32, -bound, bound)
        return w, b

    w1_raw, b1_lin = lin(ks[0], ks[1], IN_F, H1_F)
    w2_raw, b2_lin = lin(ks[2], ks[3], H1_F, H2_F)
    w3_raw, b3_lin = lin(ks[4], ks[5], H2_F, OUT_F)

    # BatchNorm1d (fresh module, eval mode): gamma=1, beta=0, mean=0, var=1.
    # Fold: scale = gamma/sqrt(var+eps); w' = w*scale; shift = scale*(b-mean)+beta
    def fold_bn(w, b_lin, n):
        gamma = jnp.ones((n,), jnp.float32)
        beta = jnp.zeros((n,), jnp.float32)
        r_mean = jnp.zeros((n,), jnp.float32)
        r_var = jnp.ones((n,), jnp.float32)
        scale = gamma * jax.lax.rsqrt(r_var + BN_EPS)
        return w * scale[None, :], scale * (b_lin - r_mean) + beta

    w1f, sh1 = fold_bn(w1_raw, b1_lin, H1_F)
    w2f, sh2 = fold_bn(w2_raw, b2_lin, H2_F)

    # pad decoder output columns 83 -> 128 (zero weights / zero bias)
    w3p = jnp.zeros((H2_F, OUT_P), jnp.float32).at[:, :OUT_F].set(w3_raw)
    b3p = jnp.zeros((OUT_P,), jnp.float32).at[:OUT_F].set(b3_lin)

    return (w1f.astype(jnp.bfloat16), sh1.reshape(1, H1_F),
            w2f.astype(jnp.bfloat16), sh2.reshape(1, H2_F),
            w3p.astype(jnp.bfloat16), b3p.reshape(1, OUT_P))


def nn_forward_ref(x, params):
    """Pure-JAX reference of the same folded, bf16-matmul forward (f32 out)."""
    w1, b1, w2, b2, w3, b3 = params
    h1 = jnp.maximum(jnp.dot(x.astype(jnp.bfloat16), w1,
                             preferred_element_type=jnp.float32) + b1, 0.0)
    h2 = jnp.maximum(jnp.dot(h1.astype(jnp.bfloat16), w2,
                             preferred_element_type=jnp.float32) + b2, 0.0)
    y = jnp.dot(h2.astype(jnp.bfloat16), w3,
                preferred_element_type=jnp.float32) + b3
    return y[:, :OUT_F]


if __name__ == "__main__":
    key = jax.random.PRNGKey(0)
    kx1, kx2, kp = jax.random.split(key, 3)
    params = init_params(kp)

    # tolerance: both sides use bf16 matmuls; pallas output is additionally
    # quantized to bf16 at the store (~0.4% rel), so compare loosely.
    ATOL, RTOL = 3e-2, 2e-2

    # small-shape smoke test (single tile, single grid step)
    B = 8
    x = jax.random.normal(kx1, (B, IN_F), jnp.float32)
    y_pad = jax.block_until_ready(nn_forward_pallas(x, params))
    assert y_pad.shape == (B, OUT_P) and y_pad.dtype == jnp.bfloat16, (y_pad.shape, y_pad.dtype)
    y = jnp.asarray(y_pad[:, :OUT_F], jnp.float32)        # consumer-side slice
    y_ref = nn_forward_ref(x, params)
    assert jnp.allclose(y, y_ref, atol=ATOL, rtol=RTOL), "mismatch vs reference (B=8)"
    assert jnp.all(y_pad[:, OUT_F:] == 0), "padding columns not zero"

    # ragged, multi-tile batch: exercises non-divisible grid (tail-row masking)
    # and the >=2-grid-step (v7x two-core) tile selection.
    B2 = 300
    x2 = jax.random.normal(kx2, (B2, IN_F), jnp.float32)
    y2_pad = jax.block_until_ready(nn_forward_pallas(x2, params))
    assert y2_pad.shape == (B2, OUT_P), y2_pad.shape
    y2 = jnp.asarray(y2_pad[:, :OUT_F], jnp.float32)
    y2_ref = nn_forward_ref(x2, params)
    assert jnp.allclose(y2, y2_ref, atol=ATOL, rtol=RTOL), "mismatch vs reference (B=300)"

    # strict (B, 83) f32 module-semantics wrapper still works
    y3 = jax.block_until_ready(nn_forward(x2, params))
    assert y3.shape == (B2, OUT_F), y3.shape
    assert jnp.allclose(y3, y2_ref, atol=ATOL, rtol=RTOL), "mismatch vs reference (nn_forward)"

    print("KERNEL_OK")
</pallas_src>

<mosaic_0001>
module attributes {stable_mosaic.version = 11 : i64} {
  func.func @_mlp_kernel(%arg0: i32, %arg1: memref<8x85xf32, #tpu.memory_space<vmem>>, %arg2: memref<85x256xbf16, #tpu.memory_space<vmem>>, %arg3: memref<1x256xf32, #tpu.memory_space<vmem>>, %arg4: memref<256x128xbf16, #tpu.memory_space<vmem>>, %arg5: memref<1x128xf32, #tpu.memory_space<vmem>>, %arg6: memref<128x128xbf16, #tpu.memory_space<vmem>>, %arg7: memref<1x128xf32, #tpu.memory_space<vmem>>, %arg8: memref<8x128xbf16, #tpu.memory_space<vmem>>) attributes {dimension_semantics = [#tpu.dimension_semantics<parallel>], iteration_bounds = array<i64: 1>, scalar_prefetch = 0 : i64, scratch_operands = 0 : i64, tpu.core_type = #tpu.core_type<tc>, window_params = [{transform_indices = @transform_0, window_bounds = array<i64: 8, 85>}, {pipeline_mode = #tpu.pipeline_mode<synchronous>, transform_indices = @transform_1, window_bounds = array<i64: 85, 256>}, {pipeline_mode = #tpu.pipeline_mode<synchronous>, transform_indices = @transform_2, window_bounds = array<i64: 1, 256>}, {pipeline_mode = #tpu.pipeline_mode<synchronous>, transform_indices = @transform_3, window_bounds = array<i64: 256, 128>}, {pipeline_mode = #tpu.pipeline_mode<synchronous>, transform_indices = @transform_4, window_bounds = array<i64: 1, 128>}, {pipeline_mode = #tpu.pipeline_mode<synchronous>, transform_indices = @transform_5, window_bounds = array<i64: 128, 128>}, {pipeline_mode = #tpu.pipeline_mode<synchronous>, transform_indices = @transform_6, window_bounds = array<i64: 1, 128>}, {transform_indices = @transform_7, window_bounds = array<i64: 8, 128>}]} {
    %c0 = arith.constant 0 : index
    %c0_0 = arith.constant 0 : index
    %0 = vector.load %arg1[%c0, %c0_0] : memref<8x85xf32, #tpu.memory_space<vmem>>, vector<8x85xf32>
    %1 = arith.truncf %0 : vector<8x85xf32> to vector<8x85xbf16>
    %c0_1 = arith.constant 0 : index
    %c0_2 = arith.constant 0 : index
    %2 = vector.load %arg2[%c0_1, %c0_2] : memref<85x256xbf16, #tpu.memory_space<vmem>>, vector<85x256xbf16>
    %cst = arith.constant dense<0.000000e+00> : vector<8x256xf32>
    %3 = tpu.matmul %1, %2, %cst {dimension_numbers = #tpu.dot_dimension_numbers<[1], [0], [0], [1], [0, 0, 1, 1], [], []>} : vector<8x85xbf16>, vector<85x256xbf16>, vector<8x256xf32> -> vector<8x256xf32>
    %c0_3 = arith.constant 0 : index
    %c0_4 = arith.constant 0 : index
    %4 = vector.load %arg3[%c0_3, %c0_4] : memref<1x256xf32, #tpu.memory_space<vmem>>, vector<1x256xf32>
    %5 = vector.broadcast %4 : vector<1x256xf32> to vector<8x256xf32>
    %6 = arith.addf %3, %5 : vector<8x256xf32>
    %cst_5 = arith.constant 0.000000e+00 : f32
    %7 = vector.broadcast %cst_5 : f32 to vector<8x256xf32>
    %8 = arith.maximumf %6, %7 : vector<8x256xf32>
    %9 = arith.truncf %8 : vector<8x256xf32> to vector<8x256xbf16>
    %c0_6 = arith.constant 0 : index
    %c0_7 = arith.constant 0 : index
    %10 = vector.load %arg4[%c0_6, %c0_7] : memref<256x128xbf16, #tpu.memory_space<vmem>>, vector<256x128xbf16>
    %cst_8 = arith.constant dense<0.000000e+00> : vector<8x128xf32>
    %11 = tpu.matmul %9, %10, %cst_8 {dimension_numbers = #tpu.dot_dimension_numbers<[1], [0], [0], [1], [0, 0, 1, 1], [], []>} : vector<8x256xbf16>, vector<256x128xbf16>, vector<8x128xf32> -> vector<8x128xf32>
    %c0_9 = arith.constant 0 : index
    %c0_10 = arith.constant 0 : index
    %12 = vector.load %arg5[%c0_9, %c0_10] : memref<1x128xf32, #tpu.memory_space<vmem>>, vector<1x128xf32>
    %13 = vector.broadcast %12 : vector<1x128xf32> to vector<8x128xf32>
    %14 = arith.addf %11, %13 : vector<8x128xf32>
    %cst_11 = arith.constant 0.000000e+00 : f32
    %15 = vector.broadcast %cst_11 : f32 to vector<8x128xf32>
    %16 = arith.maximumf %14, %15 : vector<8x128xf32>
    %17 = arith.truncf %16 : vector<8x128xf32> to vector<8x128xbf16>
    %c0_12 = arith.constant 0 : index
    %c0_13 = arith.constant 0 : index
    %18 = vector.load %arg6[%c0_12, %c0_13] : memref<128x128xbf16, #tpu.memory_space<vmem>>, vector<128x128xbf16>
    %cst_14 = arith.constant dense<0.000000e+00> : vector<8x128xf32>
    %19 = tpu.matmul %17, %18, %cst_14 {dimension_numbers = #tpu.dot_dimension_numbers<[1], [0], [0], [1], [0, 0, 1, 1], [], []>} : vector<8x128xbf16>, vector<128x128xbf16>, vector<8x128xf32> -> vector<8x128xf32>
    %c0_15 = arith.constant 0 : index
    %c0_16 = arith.constant 0 : index
    %20 = vector.load %arg7[%c0_15, %c0_16] : memref<1x128xf32, #tpu.memory_space<vmem>>, vector<1x128xf32>
    %21 = vector.broadcast %20 : vector<1x128xf32> to vector<8x128xf32>
    %22 = arith.addf %19, %21 : vector<8x128xf32>
    %23 = arith.truncf %22 : vector<8x128xf32> to vector<8x128xbf16>
    %c0_17 = arith.constant 0 : index
    %c0_18 = arith.constant 0 : index
    %24 = vector.load %arg8[%c0_17, %c0_18] : memref<8x128xbf16, #tpu.memory_space<vmem>>, vector<8x128xbf16>
    tpu.vector_store %arg8[%c0_17, %c0_18], %23 {strides = array<i32>} : memref<8x128xbf16, #tpu.memory_space<vmem>>, vector<8x128xbf16>,
    return
  }
  func.func @transform_0(%arg0: i32) -> (i32, i32) {
    %c0_i32 = arith.constant 0 : i32
    %c0_i32_0 = arith.constant 0 : i32
    return %arg0, %c0_i32 : i32, i32
  }
  func.func @transform_1(%arg0: i32) -> (i32, i32) {
    %c0_i32 = arith.constant 0 : i32
    %c0_i32_0 = arith.constant 0 : i32
    %c0_i32_1 = arith.constant 0 : i32
    return %c0_i32, %c0_i32_0 : i32, i32
  }
  func.func @transform_2(%arg0: i32) -> (i32, i32) {
    %c0_i32 = arith.constant 0 : i32
    %c0_i32_0 = arith.constant 0 : i32
    %c0_i32_1 = arith.constant 0 : i32
    return %c0_i32, %c0_i32_0 : i32, i32
  }
  func.func @transform_3(%arg0: i32) -> (i32, i32) {
    %c0_i32 = arith.constant 0 : i32
    %c0_i32_0 = arith.constant 0 : i32
    %c0_i32_1 = arith.constant 0 : i32
    return %c0_i32, %c0_i32_0 : i32, i32
  }
  func.func @transform_4(%arg0: i32) -> (i32, i32) {
    %c0_i32 = arith.constant 0 : i32
    %c0_i32_0 = arith.constant 0 : i32
    %c0_i32_1 = arith.constant 0 : i32
    return %c0_i32, %c0_i32_0 : i32, i32
  }
  func.func @transform_5(%arg0: i32) -> (i32, i32) {
    %c0_i32 = arith.constant 0 : i32
    %c0_i32_0 = arith.constant 0 : i32
    %c0_i32_1 = arith.constant 0 : i32
    return %c0_i32, %c0_i32_0 : i32, i32
  }
  func.func @transform_6(%arg0: i32) -> (i32, i32) {
    %c0_i32 = arith.constant 0 : i32
    %c0_i32_0 = arith.constant 0 : i32
    %c0_i32_1 = arith.constant 0 : i32
    return %c0_i32, %c0_i32_0 : i32, i32
  }
  func.func @transform_7(%arg0: i32) -> (i32, i32) {
    %c0_i32 = arith.constant 0 : i32
    %c0_i32_0 = arith.constant 0 : i32
    return %arg0, %c0_i32 : i32, i32
  }
}

</mosaic_0001>

<bundles_post_ra>
// kernel: tpu_custom_call.1
= control target key start
LH: loop header
LB: loop body
LE: loop exit
PB: predicated region body
PF: predicated region fallthrough
CT: control target
= control target key end

     0   :  { %12 = vsyncpa [#allocation3], 0  ;;  %s911_s0 = inlined_call_operand.hbm [shape: f32[8,85], index: 0, kind: input, shape index: {}]   ;;  %s912_s1 = inlined_call_operand.hbm [shape: bf16[85,256], index: 1, kind: input, shape index: {}]   ;;  %s913_s2 = inlined_call_operand.vmem [shape: f32[1,256], index: 2, kind: input, shape index: {}]   ;;  %s914_s3 = inlined_call_operand.hbm [shape: bf16[256,128], index: 3, kind: input, shape index: {}]   ;;  %s915_s4 = inlined_call_operand.vmem [shape: f32[1,128], index: 4, kind: input, shape index: {}]   ;;  %s916_s5 = inlined_call_operand.hbm [shape: bf16[128,128], index: 5, kind: input, shape index: {}]   ;;  %s917_s6 = inlined_call_operand.vmem [shape: f32[1,128], index: 6, kind: input, shape index: {}]   ;;  %s918_s7 = inlined_call_operand.hbm [shape: bf16[8,128], index: 7, kind: output, shape index: {}]  }
   0x1   :  { %13 = vsyncpa [#allocation6], 0 }
   0x2   :  { %14 = vsyncpa [#allocation9], 0 }
   0x3   :  { %15 = vsyncpa [#allocation4], 0  ;;  %s789_s24 = smov [#allocation5]   ;;  %s671_s28 = scalar_lea.hbm %s912_s1, 1408 }
   0x4   :  { %s31_s25 = sshll.u32 %s789_s24, 4  ;;  %p672_p0 = scmp.ne.s32.totalorder %s912_s1, %s671_s28  ;;  %s32_s25 = int_to_ptr.vmem [resolvable:$true] %s31_s25 }
   0x5   :  { %p675_p1 = scmp.lt.u32.totalorder %s671_s28, %s912_s1 }
   0x7   :  { %p677_p2 = pnand %p675_p1, %p672_p0 }
   0x9   :  { %680 = shalt.err (!%p677_p2)
}
   0xa   :  { %s681_s10 = scalar_lea.vmem %s32_s25, 1408  ;;  %p686_p4 = scmp.lt.s32.totalorder %s32_s25, %s32_s25 }
   0xb   :  { %p682_p3 = scmp.ne.s32.totalorder %s32_s25, %s681_s10  ;;  %p687_p5 = scmp.lt.s32.totalorder %s681_s10, %s681_s10 }
   0xd   :  { %p688_p6 = por %p687_p5, %p686_p4 }
   0xf   :  { %p689_p7 = pnand %p688_p6, %p682_p3 }
  0x11   :  { %692 = shalt.err (!%p689_p7)
}
  0x12   :  { %s790_s11 = smov 128   ;;  %s791_s12 = smov 8  }
  0x13   :  { %37 = dma.hbm_to_vmem [thread:$0]  %s912_s1, 1408, %s32_s25, [#allocation6], %s790_s11, %s790_s11, %s791_s12  }
  0x14   :  { %s792_s15 = smov [#allocation2]   ;;  %s793_s17 = smov [#allocation7]  }
  0x15   :  { %s22_s16 = sshll.u32 %s792_s15, 4  ;;  %s45_s18 = sshll.u32 %s793_s17, 4  ;;  %s23_s16 = int_to_ptr.vmem [resolvable:$true] %s22_s16  ;;  %s46_s18 = int_to_ptr.vmem [resolvable:$true] %s45_s18 }
  0x16   :  { %s693_s21 = scalar_lea.hbm %s911_s0, 128 }
  0x17   :  { %p694_p8 = scmp.ne.s32.totalorder %s911_s0, %s693_s21  ;;  %p697_p9 = scmp.lt.u32.totalorder %s693_s21, %s911_s0 }
  0x19   :  { %p699_p10 = pnand %p697_p9, %p694_p8 }
  0x1b   :  { %702 = shalt.err (!%p699_p10)
}
  0x1c   :  { %s703_s1 = scalar_lea.vmem %s23_s16, 128  ;;  %p708_p12 = scmp.lt.s32.totalorder %s23_s16, %s23_s16 }
  0x1d   :  { %p704_p11 = scmp.ne.s32.totalorder %s23_s16, %s703_s1  ;;  %p709_p13 = scmp.lt.s32.totalorder %s703_s1, %s703_s1 }
  0x1f   :  { %p710_p0 = por %p709_p13, %p708_p12 }
  0x21   :  { %p711_p1 = pnand %p710_p0, %p704_p11 }
  0x23   :  { %714 = shalt.err (!%p711_p1)
}
  0x24   :  { %25 = dma.hbm_to_vmem [thread:$0]  %s911_s0, 128, %s23_s16, [#allocation3]  }
  0x25   :  { %s715_s30 = scalar_lea.hbm %s914_s3, 2048 }
  0x26   :  { %p716_p2 = scmp.ne.s32.totalorder %s914_s3, %s715_s30  ;;  %p719_p3 = scmp.lt.u32.totalorder %s715_s30, %s914_s3 }
  0x28   :  { %p721_p4 = pnand %p719_p3, %p716_p2 }
  0x2a   :  { %724 = shalt.err (!%p721_p4)
}
  0x2b   :  { %s725_s12 = scalar_lea.vmem %s46_s18, 2048  ;;  %p730_p6 = scmp.lt.s32.totalorder %s46_s18, %s46_s18 }
  0x2c   :  { %p726_p5 = scmp.ne.s32.totalorder %s46_s18, %s725_s12  ;;  %p731_p7 = scmp.lt.s32.totalorder %s725_s12, %s725_s12 }
  0x2e   :  { %p732_p8 = por %p731_p7, %p730_p6 }
  0x30   :  { %p733_p9 = pnand %p732_p8, %p726_p5 }
  0x32   :  { %736 = shalt.err (!%p733_p9)
}
  0x33   :  { %s794_s0 = smov 64   ;;  %s795_s13 = smov 4  }
  0x34   :  { %51 = dma.hbm_to_vmem [thread:$0]  %s914_s3, 2048, %s46_s18, [#allocation6], %s794_s0, %s794_s0, %s795_s13  }
  0x35   :  { %s796_s16 = smov [#allocation8]   ;;  %s737_s21 = scalar_lea.hbm %s916_s5, 1024 }
  0x36   :  { %s59_s17 = sshll.u32 %s796_s16, 4  ;;  %p738_p10 = scmp.ne.s32.totalorder %s916_s5, %s737_s21  ;;  %s60_s17 = int_to_ptr.vmem [resolvable:$true] %s59_s17 }
  0x37   :  { %p741_p11 = scmp.lt.u32.totalorder %s737_s21, %s916_s5 }
  0x39   :  { %p743_p12 = pnand %p741_p11, %p738_p10 }
  0x3b   :  { %746 = shalt.err (!%p743_p12)
}
  0x3c   :  { %s747_s1 = scalar_lea.vmem %s60_s17, 1024  ;;  %p752_p0 = scmp.lt.s32.totalorder %s60_s17, %s60_s17 }
  0x3d   :  { %p748_p13 = scmp.ne.s32.totalorder %s60_s17, %s747_s1  ;;  %p753_p1 = scmp.lt.s32.totalorder %s747_s1, %s747_s1 }
  0x3f   :  { %p754_p2 = por %p753_p1, %p752_p0 }
  0x41   :  { %p755_p3 = pnand %p754_p2, %p748_p13 }
  0x43   :  { %758 = shalt.err (!%p755_p3)
}
  0x44   :  { %65 = dma.hbm_to_vmem [thread:$0]  %s916_s5, 1024, %s60_s17, [#allocation9], %s794_s0, %s794_s0, %s795_s13  }
  0x45   :  { %781 = dma.done.wait [#allocation3], 128  }
  0x46   :  { %782 = vsyncadd [#allocation3], 4294967168 }
  0x47   :  { %783 = dma.done.wait [#allocation6], 3456  }
  0x48   :  { %784 = vsyncadd [#allocation6], 4294963840 }
  0x49   :  { %785 = dma.done.wait [#allocation9], 1024  }
  0x4a   :  { %786 = vsyncadd [#allocation9], 4294966272  ;;  %v797_v0 = vmov 0   ;;  %v630_v1 = vld [vmem:[#allocation5 + $0x4] ss:$8 sps:$4 sm:$0xff]   ;;  %vm165_vm0 = vcmask 1041408   ;;  %v96_v44 = vlaneseq }
  0x4b   :  { %207 = vmatprep.mubr.bf16.mxu0 %v797_v0  ;;  %v632_v2 = vld [vmem:[#allocation5] ss:$8 sps:$4 sm:$0xff]   ;;  %175 = vmatprep.subr.bf16.mxu0 %v630_v1  ;;  %v633_v3 = vld [vmem:[#allocation5 + $0x14] ss:$8 sps:$4 sm:$0xff]   ;;  %v635_v4 = vld [vmem:[#allocation5 + $0x10] ss:$8 sps:$4 sm:$0xff]  }
  0x4c   :  { %176 = vmatpush1.bf16.msra.mxu0 %v632_v2  ;;  %v636_v5 = vld [vmem:[#allocation5 + $0x24] ss:$8 sps:$4 sm:$0xff]   ;;  %v638_v6 = vld [vmem:[#allocation5 + $0x20] ss:$8 sps:$4 sm:$0xff]   ;;  %v639_v7 = vld [vmem:[#allocation5 + $0x34] ss:$8 sps:$4 sm:$0xff]  }
  0x4d   :  { %177 = vmatprep.subr.bf16.mxu0 %v633_v3  ;;  %v93_v8 = vld [vmem:[#allocation5 + $0x50] sm:$0x77]  ;;  %v647_v9 = vld [vmem:[#allocation7 + $0x40] sm:$0xff]   ;;  %vm166_vm1 = vcmask 1042432   ;;  %v642_v12 = vld [vmem:[#allocation5 + $0x44] ss:$8 sps:$4 sm:$0xff]  }
  0x4e   :  { %v641_v10 = vld [vmem:[#allocation5 + $0x30] ss:$8 sps:$4 sm:$0xff]   ;;  %v798_v13 = vmov 65535   ;;  %566 = vmatprep.subr.bf16.mxu1 %v647_v9  ;;  %v649_v15 = vld [vmem:[#allocation7 + $0x48] sm:$0xff]   ;;  %v538_v17 = vcombine.high %v93_v8, %v93_v8  ;;  %v651_v18 = vld [vmem:[#allocation7 + $0x50] sm:$0xff]   ;;  %v537_v21 = vcombine.low %v93_v8, %v93_v8  ;;  %vm161_vm2 = vcmask 695296  }
  0x4f   :  { %v648_v11 = vld [vmem:[#allocation7] sm:$0xff]   ;;  %v167_v14 = vsel %vm165_vm0, 4294967295, %v798_v13  ;;  %v650_v16 = vld [vmem:[#allocation7 + $0x8] sm:$0xff]   ;;  %v652_v22 = vld [vmem:[#allocation7 + $0x10] sm:$0xff]   ;;  %v799_v38 = vmov 0.0   ;;  %v97_v45 = vshrl.u32 %v96_v44, 7 }
  0x50   :  { %178 = vmatpush1.bf16.msra.mxu0 %v635_v4  ;;  %567 = vmatpush3.bf16.msra.mxu1 %v648_v11  ;;  %v168_v19 = vsel %vm166_vm1, %v167_v14, 0  ;;  %v644_v20 = vld [vmem:[#allocation5 + $0x40] ss:$8 sps:$4 sm:$0xff]   ;;  %v653_v24 = vld [vmem:[#allocation7 + $0x58] sm:$0xff]   ;;  %v81_v25 = vld [vmem:[#allocation2] sm:$0xff]  ;;  %vm800_vm3 = vmmov 0  }
  0x51   :  { %179 = vmatprep.subr.bf16.mxu0 %v636_v5  ;;  %568 = vmatprep.subr.bf16.mxu1 %v649_v15  ;;  %v173_v23 = vand.u32 %v538_v17, %v168_v19  ;;  %v170_v26 = vand.u32 %v537_v21, %v168_v19  ;;  %v654_v27 = vld [vmem:[#allocation7 + $0x18] sm:$0xff]   ;;  %v655_v28 = vld [vmem:[#allocation7 + $0x60] sm:$0xff]   ;;  %v82_v30 = vpack.c.bf16 %v81_v25, %v81_v25  ;;  %v657_v31 = vld [vmem:[#allocation7 + $0x68] sm:$0xff]   ;;  %v98_v46 = vsub.s32 0, %v97_v45  ;;  %s801_s30 = smov [#allocation10]  }
  0x52   :  { %v656_v29 = vld [vmem:[#allocation7 + $0x20] sm:$0xff]   ;;  %v658_v32 = vld [vmem:[#allocation7 + $0x28] sm:$0xff]   ;;  %v659_v33 = vld [vmem:[#allocation7 + $0x70] sm:$0xff]   ;;  %v102_v48 = vsub.s32 1, %v97_v45  ;;  %s516_s8 = sshll.u32 %s801_s30, 4  ;;  %s517_s8 = int_to_ptr.vmem [resolvable:$true] %s516_s8 }
  0x53   :  { %v660_v34 = vld [vmem:[#allocation7 + $0x30] sm:$0xff]   ;;  %v661_v35 = vld [vmem:[#allocation7 + $0x78] sm:$0xff]   ;;  %v663_v37 = vld [vmem:[#allocation8] sm:$0xff]   ;;  %p764_p5 = scmp.lt.s32.totalorder %s517_s8, %s517_s8 }
  0x54   :  { %180 = vmatpush1.bf16.msra.mxu0 %v638_v6  ;;  %569 = vmatpush3.bf16.msra.mxu1 %v650_v16  ;;  %v662_v36 = vld [vmem:[#allocation7 + $0x38] sm:$0xff]   ;;  %v664_v39 = vld [vmem:[#allocation8 + $0x8] sm:$0xff]   ;;  %v665_v40 = vld [vmem:[#allocation8 + $0x10] sm:$0xff]  }
  0x55   :  { %181 = vmatprep.subr.bf16.mxu0 %v639_v7  ;;  %570 = vmatprep.subr.bf16.mxu1 %v651_v18  ;;  %v666_v41 = vld [vmem:[#allocation8 + $0x18] sm:$0xff]   ;;  %v667_v42 = vld [vmem:[#allocation8 + $0x20] sm:$0xff]   ;;  %v668_v43 = vld [vmem:[#allocation8 + $0x28] sm:$0xff]  }
  0x56   :  { %v94_v47 = vld [vmem:[%s913_s2] sm:$0x3]  ;;  %v669_v61 = vld [vmem:[#allocation8 + $0x30] sm:$0xff]   ;;  %v670_v62 = vld [vmem:[#allocation8 + $0x38] sm:$0xff]  }
  0x57   :  { %v99_v49 = vrot.slane %v94_v47, %v98_v46  ;;  %v103_v50 = vrot.slane %v94_v47, %v102_v48  ;;  %v540_v0 = vld [vmem:[%s915_s4] ss:$0 sm:$0xff]  ;;  %s759_s4 = scalar_lea.vmem %s517_s8, 64 }
  0x58   :  { %182 = vmatpush1.bf16.msra.mxu0 %v641_v10  ;;  %571 = vmatpush3.bf16.msra.mxu1 %v652_v22  ;;  %v557_v8 = vld [vmem:[%s917_s6] ss:$0 sm:$0xff]  ;;  %p760_p4 = scmp.ne.s32.totalorder %s517_s8, %s759_s4  ;;  %p765_p6 = scmp.lt.s32.totalorder %s759_s4, %s759_s4 }
  0x59   :  { %183 = vmatprep.subr.bf16.mxu0 %v642_v12  ;;  %572 = vmatprep.subr.bf16.mxu1 %v653_v24 }
  0x5a   :  { %p766_p7 = por %p765_p6, %p764_p5 }
  0x5c   :  { %184 = vmatpush1.bf16.msra.mxu0 %v644_v20  ;;  %573 = vmatpush3.bf16.msra.mxu1 %v654_v27  ;;  %p767_p8 = pnand %p766_p7, %p760_p4 }
  0x5d   :  { %185 = vmatprep.subr.bf16.mxu0 %v173_v23  ;;  %574 = vmatprep.subr.bf16.mxu1 %v655_v28 }
  0x60   :  { %186 = vmatpush1.bf16.msra.mxu0 %v170_v26  ;;  %575 = vmatpush3.bf16.msra.mxu1 %v656_v29 }
  0x61   :  { %576 = vmatprep.subr.bf16.mxu1 %v657_v31  ;;  %597 = vmatprep.subr.bf16.mxu0 %v799_v38 }
  0x63   :  { %539 = vmatmul.mubr.msk.bf16.vlgmr.msra.gmra.mrb[0].mxu0 %vm161_vm2, %v82_v30 }
  0x64   :  { %577 = vmatpush3.bf16.msra.mxu1 %v658_v32  ;;  %598 = vmatpush3.bf16.msra.mxu0 %v663_v37 }
  0x65   :  { %578 = vmatprep.subr.bf16.mxu1 %v659_v33  ;;  %599 = vmatprep.subr.bf16.mxu0 %v799_v38 }
  0x66   :  { %613 = vmatprep.mubr.msk.bf16.mxu0 %vm800_vm3, %v799_v38 }
  0x68   :  { %579 = vmatpush3.bf16.msra.mxu1 %v660_v34  ;;  %600 = vmatpush3.bf16.msra.mxu0 %v664_v39 }
  0x69   :  { %580 = vmatprep.subr.bf16.mxu1 %v661_v35  ;;  %601 = vmatprep.subr.bf16.mxu0 %v799_v38 }
  0x6c   :  { %581 = vmatpush3.bf16.msra.mxu1 %v662_v36  ;;  %602 = vmatpush3.bf16.msra.mxu0 %v665_v40 }
  0x6d   :  { %603 = vmatprep.subr.bf16.mxu0 %v799_v38 }
  0x70   :  { %604 = vmatpush3.bf16.msra.mxu0 %v666_v41 }
  0x71   :  { %605 = vmatprep.subr.bf16.mxu0 %v799_v38 }
  0x74   :  { %606 = vmatpush3.bf16.msra.mxu0 %v667_v42 }
  0x75   :  { %607 = vmatprep.subr.bf16.mxu0 %v799_v38 }
  0x78   :  { %608 = vmatpush3.bf16.msra.mxu0 %v668_v43 }
  0x79   :  { %609 = vmatprep.subr.bf16.mxu0 %v799_v38 }
  0x7c   :  { %610 = vmatpush3.bf16.msra.mxu0 %v669_v61 }
  0x7d   :  { %611 = vmatprep.subr.bf16.mxu0 %v799_v38 }
  0x80   :  { %612 = vmatpush3.bf16.msra.mxu0 %v670_v62 }
 0x136   :  { %v209_v51 = vpop.f32.mrb[0].mxu0 }
 0x137   :  { %v210_v52 = vadd.f32 %v209_v51, %v99_v49  ;;  %v211_v53 = vpop.f32.mrb[1].mxu0 }
 0x138   :  { %v212_v54 = vadd.f32 %v211_v53, %v103_v50  ;;  %v213_v55 = vpop.f32.mrb[2].mxu0 }
 0x139   :  { %v216_v56 = vmax.f32 %v210_v52, 0.0  ;;  %v214_v57 = vpop.f32.mrb[3].mxu0 }
 0x13a   :  { %v217_v58 = vmax.f32 %v212_v54, 0.0 }
 0x13b   :  { %v218_v60 = vpack.c.bf16 %v216_v56, %v216_v56 }
 0x13c   :  { %v219_v59 = vpack.c.bf16 %v217_v58, %v217_v58 }
 0x13e   :  { %387 = vmatprep.mubr.bf16.mxu1 %v219_v59 }
 0x13f   :  { %388 = vmatmul.mubr.bf16.vlgmr.msra.gmra.mrb[0].mxu1 %v218_v60 }
 0x212   :  { %v582_v63 = vpop.f32.mrb[0].mxu1 }
 0x213   :  { %v583_v1 = vpop.f32.mrb[1].mxu1 }
 0x214   :  { %v584_v2 = vadd.f32 %v583_v1, %v582_v63  ;;  %v585_v3 = vpop.f32.mrb[2].mxu1 }
 0x215   :  { %v586_v4 = vpop.f32.mrb[3].mxu1 }
 0x216   :  { %v390_v5 = vadd.f32 %v584_v2, %v540_v0 }
 0x218   :  { %v395_v6 = vmax.f32 %v390_v5, 0.0 }
 0x21a   :  { %v396_v7 = vpack.c.bf16 %v395_v6, %v395_v6 }
 0x21c   :  { %614 = vmatmul.mubr.bf16.vlgmr.msra.gmra.mrb[4].mxu0 %v396_v7 }
 0x2ef   :  { %v502_v9 = vpop.f32.mrb[4].mxu0 }
 0x2f0   :  { %v503_v10 = vadd.f32 %v557_v8, %v502_v9  ;;  %v615_v11 = vpop.f32.mrb[5].mxu0 }
 0x2f1   :  { %v505_v12 = vpop.f32.mrb[6].mxu0 }
 0x2f2   :  { %v508_v13 = vpack.c.bf16 %v503_v10, %v503_v10  ;;  %v616_v14 = vpop.f32.mrb[7].mxu0 }
 0x2f4   :  { %509 = vst [vmem:[#allocation10] sm:$0xf] %v508_v13 }
 0x2f5   :  { %770 = shalt.err (!%p767_p8)
}
 0x2f6   :  { %s771_s6 = scalar_lea.hbm %s918_s7, 64 }
 0x2f7   :  { %p772_p9 = scmp.ne.s32.totalorder %s918_s7, %s771_s6  ;;  %p775_p10 = scmp.lt.u32.totalorder %s771_s6, %s918_s7 }
 0x2f9   :  { %p777_p11 = pnand %p775_p10, %p772_p9 }
 0x2fb   :  { %780 = shalt.err (!%p777_p11)
}
 0x2fc   :  { %519 = dma.vmem_to_hbm [thread:$0]  %s517_s8, 64, %s918_s7, [#allocation4]  }
 0x2fd   :  { %787 = dma.done.wait [#allocation4], 64  }
 0x2fe   :  { %788 = vsyncadd [#allocation4], 4294967232 }
 0x2ff   :  { %523 = vsyncpa [#allocation3], 1 }
 0x300   :  { %524 = vsyncpa [#allocation6], 1 }
 0x301   :  { %525 = vsyncpa [#allocation9], 1 }
 0x302   :  { %526 = vsyncpa [#allocation4], 1 }

</bundles_post_ra>
